<compile_context>
chip_gen: v7x
topology: tpu7x:2x2x1
jax: 0.10.0
libtpu: 0.0.40
codegen_flags: <defaults>
</compile_context>

<pallas_src>
from functools import partial

import jax
import jax.numpy as jnp
from jax.experimental import pallas as pl
from jax.experimental.pallas import tpu as pltpu


_LANE_WIDTH = 1024          # lane-dense last dim (8 f32 vregs wide), power of 2
_LOG2_LANE = 10
_MAX_TILE_ROWS = 256        # (256, 1024) f32 tile = 1 MiB per array per buffer
                            # -> <= 8 MiB live with double buffering: fits the
                            #    default scoped VMEM on v5e/v6e/v7x.


def _keep_mask(seed_ref, shape, tile_rows, threshold31):
    """Per-element keep decision via a counter-based ARX hash.

    Uses only add/xor/shift/or on uint32 plus one signed int32 compare, so it
    lowers on TPU Mosaic and in interpret mode alike.  5 ARX rounds keep the
    VPU work below the HBM roofline while decorrelating neighbouring indices.
    """
    base = pl.program_id(0) * tile_rows
    row = jax.lax.broadcasted_iota(jnp.int32, shape, 0) + base
    col = jax.lax.broadcasted_iota(jnp.int32, shape, 1)
    # Global element index (lane width is a power of two -> shift, no multiply).
    idx = ((row << _LOG2_LANE) | col).astype(jnp.uint32)

    seed = seed_ref[0].astype(jnp.uint32)
    k0 = seed
    k1 = seed ^ jnp.uint32(0x1BD11BDA)

    x = idx + k0
    y = (idx ^ jnp.uint32(0x9E3779B9)) + k1
    for r in (13, 15, 26, 6, 17):            # threefry-style mix rounds
        x = x + y
        y = (y << r) | (y >> (32 - r))       # logical shifts on uint32
        y = x ^ y
    bits = x + y                             # ~uniform uint32

    # Compare the top 31 bits as a signed int (exact, avoids unsigned cmp).
    bits31 = (bits >> 1).astype(jnp.int32)
    return bits31 > jnp.int32(threshold31)   # keep with probability ~(1 - p)


def _dropout_kernel_with_mask(seed_ref, mean_ref, mask_ref,
                              mean_out_ref, mask_out_ref,
                              *, tile_rows, threshold31):
    keep = _keep_mask(seed_ref, mean_ref.shape, tile_rows, threshold31)
    m = mean_ref[...]
    k = mask_ref[...]
    mean_out_ref[...] = jnp.where(keep, m, jnp.zeros_like(m))
    mask_out_ref[...] = jnp.where(keep, k, jnp.zeros_like(k))


def _dropout_kernel_no_mask(seed_ref, mean_ref,
                            mean_out_ref, mask_out_ref,
                            *, tile_rows, threshold31):
    keep = _keep_mask(seed_ref, mean_ref.shape, tile_rows, threshold31)
    m = mean_ref[...]
    mean_out_ref[...] = jnp.where(keep, m, jnp.zeros_like(m))
    mask_out_ref[...] = keep.astype(mask_out_ref.dtype)


def _to_lane_dense(a, rows_padded):
    """Flatten to 1-D, zero-pad, and view as (rows_padded, _LANE_WIDTH)."""
    flat = a.reshape(-1)
    pad = rows_padded * _LANE_WIDTH - flat.size
    if pad:
        flat = jnp.pad(flat, (0, pad))
    return flat.reshape(rows_padded, _LANE_WIDTH)


def dropout_forward(x, *, p=0.2, seed=0, training=True):
    """Pallas equivalent of Dropout.forward on the 5-tuple input.

    NOTE: callers should thread a fresh `seed` per training step / layer,
    otherwise the dropout pattern repeats across calls.
    """
    if not training:
        return x

    coordsin, meanin, stdin, mask, ids = x

    n_elem = meanin.size
    rows = -(-n_elem // _LANE_WIDTH)                 # ceil
    tile_rows = min(_MAX_TILE_ROWS, rows)
    n_tiles = -(-rows // tile_rows)
    rows_padded = n_tiles * tile_rows

    mean2d = _to_lane_dense(meanin, rows_padded)
    seed_arr = jnp.asarray([seed], dtype=jnp.int32)

    # keep element iff uniform-u31 bits > threshold31  (prob ~ 1 - p)
    threshold31 = max(0, min(int(p * (1 << 31)), (1 << 31) - 1))

    block = pl.BlockSpec((tile_rows, _LANE_WIDTH), lambda i: (i, 0))
    seed_spec = pl.BlockSpec(memory_space=pltpu.MemorySpace.SMEM)
    cparams = pltpu.CompilerParams(dimension_semantics=("parallel",))

    if mask is not None:
        mask_out_dtype = jnp.result_type(jnp.float32, mask.dtype)
        mask2d = _to_lane_dense(mask.astype(mask_out_dtype), rows_padded)
        out_shape = (
            jax.ShapeDtypeStruct((rows_padded, _LANE_WIDTH), meanin.dtype),
            jax.ShapeDtypeStruct((rows_padded, _LANE_WIDTH), mask_out_dtype),
        )
        mean_out2d, mask_out2d = pl.pallas_call(
            partial(_dropout_kernel_with_mask,
                    tile_rows=tile_rows, threshold31=threshold31),
            grid=(n_tiles,),
            in_specs=[seed_spec, block, block],
            out_specs=(block, block),
            out_shape=out_shape,
            compiler_params=cparams,
        )(seed_arr, mean2d, mask2d)
    else:
        mask_out_dtype = jnp.float32                 # torch `.float()`
        out_shape = (
            jax.ShapeDtypeStruct((rows_padded, _LANE_WIDTH), meanin.dtype),
            jax.ShapeDtypeStruct((rows_padded, _LANE_WIDTH), mask_out_dtype),
        )
        mean_out2d, mask_out2d = pl.pallas_call(
            partial(_dropout_kernel_no_mask,
                    tile_rows=tile_rows, threshold31=threshold31),
            grid=(n_tiles,),
            in_specs=[seed_spec, block],
            out_specs=(block, block),
            out_shape=out_shape,
            compiler_params=cparams,
        )(seed_arr, mean2d)

    mean_out = mean_out2d.reshape(-1)[:n_elem].reshape(meanin.shape)
    new_mask = mask_out2d.reshape(-1)[:n_elem].reshape(meanin.shape)

    return (coordsin, mean_out, stdin, new_mask, ids)


if __name__ == "__main__":
    key = jax.random.PRNGKey(0)
    k1, k2, k3, k4 = jax.random.split(key, 4)

    bs, n, d, feat = 2, 8, 3, 32
    coordsin = jax.random.normal(k1, (bs, n, d), dtype=jnp.float32)
    meanin = jax.random.normal(k2, (bs, n, feat), dtype=jnp.float32)
    stdin = jax.random.uniform(k3, (bs, n, feat), dtype=jnp.float32)
    mask = (jax.random.uniform(k4, (bs, n, feat)) > 0.1).astype(jnp.float32)
    ids = jnp.tile(jnp.arange(n, dtype=jnp.int32)[None, :], (bs, 1))

    p = 0.2

    # ---- training, mask provided ----
    out = dropout_forward((coordsin, meanin, stdin, mask, ids),
                          p=p, seed=1234, training=True)
    out = jax.block_until_ready(out)
    coords_o, mean_o, std_o, mask_o, ids_o = out

    assert coords_o.shape == coordsin.shape
    assert mean_o.shape == meanin.shape
    assert mask_o.shape == meanin.shape
    assert bool(jnp.all(coords_o == coordsin))
    assert bool(jnp.all(std_o == stdin))
    assert bool(jnp.all(ids_o == ids))
    # mean is either preserved (kept) or zeroed (dropped)
    assert bool(jnp.all((mean_o == meanin) | (mean_o == 0.0)))
    # new_mask is either the original mask (kept) or zero (dropped)
    assert bool(jnp.all((mask_o == mask) | (mask_o == 0.0)))
    # keep/drop decision is consistent between mean and mask outputs
    kept = (mean_o == meanin) & (meanin != 0.0)
    assert bool(jnp.all(jnp.where(kept, mask_o == mask, True)))
    # keep rate roughly (1 - p)
    keep_rate = float(jnp.mean((mean_o == meanin).astype(jnp.float32)))
    assert 0.6 < keep_rate < 0.95, f"unexpected keep rate {keep_rate}"

    # ---- training, mask is None ----
    out2 = dropout_forward((coordsin, meanin, stdin, None, ids),
                           p=p, seed=77, training=True)
    out2 = jax.block_until_ready(out2)
    _, mean2_o, _, mask2_o, _ = out2
    assert bool(jnp.all((mask2_o == 0.0) | (mask2_o == 1.0)))
    assert bool(jnp.all(jnp.where(mask2_o == 1.0, mean2_o == meanin, True)))
    assert bool(jnp.all(jnp.where(mask2_o == 0.0, mean2_o == 0.0, True)))

    # ---- eval mode: identity ----
    out3 = dropout_forward((coordsin, meanin, stdin, mask, ids),
                           p=p, seed=1234, training=False)
    assert out3[1] is meanin and out3[3] is mask

    print("KERNEL_OK")
</pallas_src>

<mosaic_0001>
module attributes {stable_mosaic.version = 11 : i64} {
  func.func @_dropout_kernel_with_mask(%arg0: i32, %arg1: memref<1xi32, #tpu.memory_space<smem>>, %arg2: memref<1x1024xf32, #tpu.memory_space<vmem>>, %arg3: memref<1x1024xf32, #tpu.memory_space<vmem>>, %arg4: memref<1x1024xf32, #tpu.memory_space<vmem>>, %arg5: memref<1x1024xf32, #tpu.memory_space<vmem>>) attributes {dimension_semantics = [#tpu.dimension_semantics<parallel>], iteration_bounds = array<i64: 1>, scalar_prefetch = 0 : i64, scratch_operands = 0 : i64, tpu.core_type = #tpu.core_type<tc>, window_params = [{transform_indices = @transform_0, window_bounds = array<i64: 1>}, {transform_indices = @transform_1, window_bounds = array<i64: 1, 1024>}, {transform_indices = @transform_2, window_bounds = array<i64: 1, 1024>}, {transform_indices = @transform_3, window_bounds = array<i64: 1, 1024>}, {transform_indices = @transform_4, window_bounds = array<i64: 1, 1024>}]} {
    %c1_i32 = arith.constant 1 : i32
    %0 = arith.muli %arg0, %c1_i32 : i32
    %1 = tpu.iota {dimensions = array<i32: 0>} : vector<1x1024xi32>
    %2 = vector.broadcast %0 : i32 to vector<1x1024xi32>
    %3 = arith.addi %1, %2 : vector<1x1024xi32>
    %4 = tpu.iota {dimensions = array<i32: 1>} : vector<1x1024xi32>
    %c10_i32 = arith.constant 10 : i32
    %5 = vector.broadcast %c10_i32 : i32 to vector<1x1024xi32>
    %6 = arith.shli %3, %5 : vector<1x1024xi32>
    %7 = arith.ori %6, %4 : vector<1x1024xi32>
    %c0 = arith.constant 0 : index
    %8 = memref.load %arg1[%c0] : memref<1xi32, #tpu.memory_space<smem>>
    %c466688986_i32 = arith.constant 466688986 : i32
    %9 = arith.xori %8, %c466688986_i32 : i32
    %10 = vector.broadcast %8 : i32 to vector<1x1024xi32>
    %11 = arith.addi %7, %10 : vector<1x1024xi32>
    %c-1640531527_i32 = arith.constant -1640531527 : i32
    %12 = vector.broadcast %c-1640531527_i32 : i32 to vector<1x1024xi32>
    %13 = arith.xori %7, %12 : vector<1x1024xi32>
    %14 = vector.broadcast %9 : i32 to vector<1x1024xi32>
    %15 = arith.addi %13, %14 : vector<1x1024xi32>
    %16 = arith.addi %11, %15 : vector<1x1024xi32>
    %c13_i32 = arith.constant 13 : i32
    %17 = vector.broadcast %c13_i32 : i32 to vector<1x1024xi32>
    %18 = arith.shli %15, %17 : vector<1x1024xi32>
    %c19_i32 = arith.constant 19 : i32
    %19 = vector.broadcast %c19_i32 : i32 to vector<1x1024xi32>
    %20 = arith.shrui %15, %19 : vector<1x1024xi32>
    %21 = arith.ori %18, %20 : vector<1x1024xi32>
    %22 = arith.xori %16, %21 : vector<1x1024xi32>
    %23 = arith.addi %16, %22 : vector<1x1024xi32>
    %c15_i32 = arith.constant 15 : i32
    %24 = vector.broadcast %c15_i32 : i32 to vector<1x1024xi32>
    %25 = arith.shli %22, %24 : vector<1x1024xi32>
    %c17_i32 = arith.constant 17 : i32
    %26 = vector.broadcast %c17_i32 : i32 to vector<1x1024xi32>
    %27 = arith.shrui %22, %26 : vector<1x1024xi32>
    %28 = arith.ori %25, %27 : vector<1x1024xi32>
    %29 = arith.xori %23, %28 : vector<1x1024xi32>
    %30 = arith.addi %23, %29 : vector<1x1024xi32>
    %c26_i32 = arith.constant 26 : i32
    %31 = vector.broadcast %c26_i32 : i32 to vector<1x1024xi32>
    %32 = arith.shli %29, %31 : vector<1x1024xi32>
    %c6_i32 = arith.constant 6 : i32
    %33 = vector.broadcast %c6_i32 : i32 to vector<1x1024xi32>
    %34 = arith.shrui %29, %33 : vector<1x1024xi32>
    %35 = arith.ori %32, %34 : vector<1x1024xi32>
    %36 = arith.xori %30, %35 : vector<1x1024xi32>
    %37 = arith.addi %30, %36 : vector<1x1024xi32>
    %c6_i32_0 = arith.constant 6 : i32
    %38 = vector.broadcast %c6_i32_0 : i32 to vector<1x1024xi32>
    %39 = arith.shli %36, %38 : vector<1x1024xi32>
    %c26_i32_1 = arith.constant 26 : i32
    %40 = vector.broadcast %c26_i32_1 : i32 to vector<1x1024xi32>
    %41 = arith.shrui %36, %40 : vector<1x1024xi32>
    %42 = arith.ori %39, %41 : vector<1x1024xi32>
    %43 = arith.xori %37, %42 : vector<1x1024xi32>
    %44 = arith.addi %37, %43 : vector<1x1024xi32>
    %c17_i32_2 = arith.constant 17 : i32
    %45 = vector.broadcast %c17_i32_2 : i32 to vector<1x1024xi32>
    %46 = arith.shli %43, %45 : vector<1x1024xi32>
    %c15_i32_3 = arith.constant 15 : i32
    %47 = vector.broadcast %c15_i32_3 : i32 to vector<1x1024xi32>
    %48 = arith.shrui %43, %47 : vector<1x1024xi32>
    %49 = arith.ori %46, %48 : vector<1x1024xi32>
    %50 = arith.xori %44, %49 : vector<1x1024xi32>
    %51 = arith.addi %44, %50 : vector<1x1024xi32>
    %c1_i32_4 = arith.constant 1 : i32
    %52 = vector.broadcast %c1_i32_4 : i32 to vector<1x1024xi32>
    %53 = arith.shrui %51, %52 : vector<1x1024xi32>
    %c429496729_i32 = arith.constant 429496729 : i32
    %54 = vector.broadcast %c429496729_i32 : i32 to vector<1x1024xi32>
    %55 = arith.cmpi sgt, %53, %54 : vector<1x1024xi32>
    %c0_5 = arith.constant 0 : index
    %c0_6 = arith.constant 0 : index
    %56 = vector.load %arg2[%c0_5, %c0_6] : memref<1x1024xf32, #tpu.memory_space<vmem>>, vector<1x1024xf32>
    %c0_7 = arith.constant 0 : index
    %c0_8 = arith.constant 0 : index
    %57 = vector.load %arg3[%c0_7, %c0_8] : memref<1x1024xf32, #tpu.memory_space<vmem>>, vector<1x1024xf32>
    %cst = arith.constant 0.000000e+00 : f32
    %58 = vector.broadcast %cst : f32 to vector<1x1024xf32>
    %59 = arith.select %55, %56, %58 : vector<1x1024xi1>, vector<1x1024xf32>
    %c0_9 = arith.constant 0 : index
    %c0_10 = arith.constant 0 : index
    %60 = vector.load %arg4[%c0_9, %c0_10] : memref<1x1024xf32, #tpu.memory_space<vmem>>, vector<1x1024xf32>
    tpu.vector_store %arg4[%c0_9, %c0_10], %59 {strides = array<i32>} : memref<1x1024xf32, #tpu.memory_space<vmem>>, vector<1x1024xf32>,
    %cst_11 = arith.constant 0.000000e+00 : f32
    %61 = vector.broadcast %cst_11 : f32 to vector<1x1024xf32>
    %62 = arith.select %55, %57, %61 : vector<1x1024xi1>, vector<1x1024xf32>
    %c0_12 = arith.constant 0 : index
    %c0_13 = arith.constant 0 : index
    %63 = vector.load %arg5[%c0_12, %c0_13] : memref<1x1024xf32, #tpu.memory_space<vmem>>, vector<1x1024xf32>
    tpu.vector_store %arg5[%c0_12, %c0_13], %62 {strides = array<i32>} : memref<1x1024xf32, #tpu.memory_space<vmem>>, vector<1x1024xf32>,
    return
  }
  func.func @transform_0(%arg0: i32) -> i32 {
    %c0_i32 = arith.constant 0 : i32
    %c0_i32_0 = arith.constant 0 : i32
    return %c0_i32 : i32
  }
  func.func @transform_1(%arg0: i32) -> (i32, i32) {
    %c0_i32 = arith.constant 0 : i32
    %c0_i32_0 = arith.constant 0 : i32
    return %arg0, %c0_i32 : i32, i32
  }
  func.func @transform_2(%arg0: i32) -> (i32, i32) {
    %c0_i32 = arith.constant 0 : i32
    %c0_i32_0 = arith.constant 0 : i32
    return %arg0, %c0_i32 : i32, i32
  }
  func.func @transform_3(%arg0: i32) -> (i32, i32) {
    %c0_i32 = arith.constant 0 : i32
    %c0_i32_0 = arith.constant 0 : i32
    return %arg0, %c0_i32 : i32, i32
  }
  func.func @transform_4(%arg0: i32) -> (i32, i32) {
    %c0_i32 = arith.constant 0 : i32
    %c0_i32_0 = arith.constant 0 : i32
    return %arg0, %c0_i32 : i32, i32
  }
}

</mosaic_0001>

<bundles_post_ra>
// kernel: tpu_custom_call.1
= control target key start
LH: loop header
LB: loop body
LE: loop exit
PB: predicated region body
PF: predicated region fallthrough
CT: control target
= control target key end

     0   :  { %11 = vsyncpa [#allocation4], 0  ;;  %s877_s0 = inlined_call_operand.<no memory space> [shape: s32[1], index: 0, kind: input, shape index: {}]   ;;  %s878_s1 = inlined_call_operand.hbm [shape: f32[1,1024], index: 1, kind: input, shape index: {}]   ;;  %s879_s2 = inlined_call_operand.hbm [shape: f32[1,1024], index: 2, kind: input, shape index: {}]   ;;  %s880_s3 = inlined_call_operand.hbm [shape: f32[1,1024], index: 3, kind: output, shape index: {0}]   ;;  %s881_s4 = inlined_call_operand.hbm [shape: f32[1,1024], index: 4, kind: output, shape index: {1}]  }
   0x1   :  { %12 = vsyncpa [#allocation7], 0 }
   0x2   :  { %13 = vsyncpa [#allocation5], 0 }
   0x3   :  { %14 = vsyncpa [#allocation10], 0  ;;  %s666_s15 = smov [#allocation3]   ;;  %s667_s17 = smov [#allocation6]  }
   0x4   :  { %s23_s16 = sshll.u32 %s666_s15, 4  ;;  %s33_s18 = sshll.u32 %s667_s17, 4  ;;  %s24_s16 = int_to_ptr.vmem [resolvable:$true] %s23_s16  ;;  %s34_s18 = int_to_ptr.vmem [resolvable:$true] %s33_s18 }
   0x5   :  { %s570_s21 = scalar_lea.hbm %s878_s1, 128 }
   0x6   :  { %p571_p0 = scmp.ne.s32.totalorder %s878_s1, %s570_s21  ;;  %p574_p1 = scmp.lt.u32.totalorder %s570_s21, %s878_s1 }
   0x8   :  { %p576_p2 = pnand %p574_p1, %p571_p0 }
   0xa   :  { %579 = shalt.err (!%p576_p2)
}
   0xb   :  { %s580_s26 = scalar_lea.vmem %s24_s16, 128  ;;  %p585_p4 = scmp.lt.s32.totalorder %s24_s16, %s24_s16 }
   0xc   :  { %p581_p3 = scmp.ne.s32.totalorder %s24_s16, %s580_s26  ;;  %p586_p5 = scmp.lt.s32.totalorder %s580_s26, %s580_s26 }
   0xe   :  { %p587_p6 = por %p586_p5, %p585_p4 }
  0x10   :  { %p588_p7 = pnand %p587_p6, %p581_p3 }
  0x12   :  { %591 = shalt.err (!%p588_p7)
}
  0x13   :  { %26 = dma.hbm_to_vmem [thread:$0]  %s878_s1, 128, %s24_s16, [#allocation4]  }
  0x14   :  { %s592_s5 = scalar_lea.hbm %s879_s2, 128 }
  0x15   :  { %p593_p8 = scmp.ne.s32.totalorder %s879_s2, %s592_s5  ;;  %p596_p9 = scmp.lt.u32.totalorder %s592_s5, %s879_s2 }
  0x17   :  { %p598_p10 = pnand %p596_p9, %p593_p8 }
  0x19   :  { %601 = shalt.err (!%p598_p10)
}
  0x1a   :  { %s602_s10 = scalar_lea.vmem %s34_s18, 128  ;;  %p607_p12 = scmp.lt.s32.totalorder %s34_s18, %s34_s18 }
  0x1b   :  { %p603_p11 = scmp.ne.s32.totalorder %s34_s18, %s602_s10  ;;  %p608_p13 = scmp.lt.s32.totalorder %s602_s10, %s602_s10 }
  0x1d   :  { %p609_p0 = por %p608_p13, %p607_p12 }
  0x1f   :  { %p610_p1 = pnand %p609_p0, %p603_p11 }
  0x21   :  { %613 = shalt.err (!%p610_p1)
}
  0x22   :  { %36 = dma.hbm_to_vmem [thread:$0]  %s879_s2, 128, %s34_s18, [#allocation7]  }
  0x23   :  { %658 = dma.done.wait [#allocation4], 128  }
  0x24   :  { %659 = vsyncadd [#allocation4], 4294967168 }
  0x25   :  { %660 = dma.done.wait [#allocation7], 128  }
  0x26   :  { %661 = vsyncadd [#allocation7], 4294967168  ;;  %v43_v0 = vlaneseq  ;;  %s66_s14 = sxor.u32 466688986, %s877_s0  ;;  %v668_v1 = vmov 1966171168   ;;  %v67_v5 = vstv %s877_s0 }
  0x27   :  { %v723_v2 = vunpack.c.l.s4 %v668_v1  ;;  %v84_v6 = vstv %s66_s14  ;;  %v736_v28 = vld [vmem:[#allocation3] sm:$0xff]  ;;  %s669_s0 = smov [#allocation8]  }
  0x28   :  { %v725_v3 = vshrl.u32 %v43_v0, 7  ;;  %v48_v4 = vand.u32 127, %v43_v0  ;;  %s541_s2 = sshll.u32 %s669_s0, 4  ;;  %s542_s2 = int_to_ptr.vmem [resolvable:$true] %s541_s2 }
  0x29   :  { %v382_v7 = vunpack.c.0.s8 %v723_v2  ;;  %s614_s17 = scalar_lea.vmem %s542_s2, 128  ;;  %p619_p3 = scmp.lt.s32.totalorder %s542_s2, %s542_s2 }
  0x2a   :  { %v49_v8 = vadd.s32 128, %v48_v4  ;;  %v50_v9 = vadd.s32 256, %v48_v4  ;;  %v51_v10 = vadd.s32 384, %v48_v4  ;;  %v52_v11 = vadd.s32 512, %v48_v4  ;;  %p615_p2 = scmp.ne.s32.totalorder %s542_s2, %s614_s17  ;;  %p620_p4 = scmp.lt.s32.totalorder %s614_s17, %s614_s17 }
  0x2b   :  { %v53_v12 = vadd.s32 640, %v48_v4  ;;  %v54_v13 = vadd.s32 768, %v48_v4  ;;  %v55_v14 = vadd.s32 896, %v48_v4  ;;  %v56_v15 = vshll.u32 %v725_v3, 10 }
  0x2c   :  { %v322_v16 = vsub.s32 0, %v725_v3  ;;  %v326_v17 = vsub.s32 1, %v725_v3  ;;  %v330_v18 = vsub.s32 2, %v725_v3  ;;  %v334_v19 = vsub.s32 3, %v725_v3  ;;  %p621_p5 = por %p620_p4, %p619_p3 }
  0x2d   :  { %v57_v20 = vor.u32 %v56_v15, %v48_v4  ;;  %v58_v21 = vor.u32 %v56_v15, %v49_v8  ;;  %v59_v22 = vor.u32 %v56_v15, %v50_v9  ;;  %v60_v23 = vor.u32 %v56_v15, %v51_v10 }
  0x2e   :  { %v61_v24 = vor.u32 %v56_v15, %v52_v11  ;;  %v62_v25 = vor.u32 %v56_v15, %v53_v12  ;;  %v63_v26 = vor.u32 %v56_v15, %v54_v13  ;;  %v64_v27 = vor.u32 %v56_v15, %v55_v14  ;;  %p622_p6 = pnand %p621_p5, %p615_p2 }
  0x2f   :  { %v68_v29 = vadd.s32 %v67_v5, %v57_v20  ;;  %v69_v30 = vadd.s32 %v67_v5, %v58_v21  ;;  %v70_v31 = vadd.s32 %v67_v5, %v59_v22  ;;  %v71_v32 = vadd.s32 %v67_v5, %v60_v23 }
  0x30   :  { %v72_v33 = vadd.s32 %v67_v5, %v61_v24  ;;  %v73_v34 = vadd.s32 %v67_v5, %v62_v25  ;;  %v74_v35 = vadd.s32 %v67_v5, %v63_v26  ;;  %v75_v36 = vadd.s32 %v67_v5, %v64_v27 }
  0x31   :  { %v76_v37 = vxor.u32 2654435769, %v57_v20  ;;  %v77_v38 = vxor.u32 2654435769, %v58_v21  ;;  %v78_v39 = vxor.u32 2654435769, %v59_v22  ;;  %v741_v40 = vrot.slane %v736_v28, %v322_v16 }
  0x32   :  { %v79_v41 = vxor.u32 2654435769, %v60_v23  ;;  %v80_v42 = vxor.u32 2654435769, %v61_v24  ;;  %v81_v43 = vxor.u32 2654435769, %v62_v25  ;;  %v746_v44 = vrot.slane %v736_v28, %v326_v17 }
  0x33   :  { %v82_v45 = vxor.u32 2654435769, %v63_v26  ;;  %v83_v46 = vxor.u32 2654435769, %v64_v27  ;;  %v85_v47 = vadd.s32 %v84_v6, %v76_v37  ;;  %v86_v48 = vadd.s32 %v84_v6, %v77_v38 }
  0x34   :  { %v87_v49 = vadd.s32 %v84_v6, %v78_v39  ;;  %v88_v50 = vadd.s32 %v84_v6, %v79_v41  ;;  %v89_v51 = vadd.s32 %v84_v6, %v80_v42  ;;  %v90_v52 = vadd.s32 %v84_v6, %v81_v43 }
  0x35   :  { %v91_v53 = vadd.s32 %v84_v6, %v82_v45  ;;  %v92_v54 = vadd.s32 %v84_v6, %v83_v46  ;;  %v93_v55 = vadd.s32 %v85_v47, %v68_v29  ;;  %v94_v56 = vadd.s32 %v86_v48, %v69_v30 }
  0x36   :  { %v95_v57 = vadd.s32 %v87_v49, %v70_v31  ;;  %v96_v58 = vadd.s32 %v88_v50, %v71_v32  ;;  %v97_v59 = vadd.s32 %v89_v51, %v72_v33  ;;  %v98_v60 = vadd.s32 %v90_v52, %v73_v34 }
  0x37   :  { %v99_v61 = vadd.s32 %v91_v53, %v74_v35  ;;  %v100_v62 = vadd.s32 %v92_v54, %v75_v36  ;;  %v101_v63 = vshll.u32 %v85_v47, 13  ;;  %v102_v0 = vshll.u32 %v86_v48, 13 }
  0x38   :  { %v103_v1 = vshll.u32 %v87_v49, 13  ;;  %v104_v4 = vshll.u32 %v88_v50, 13  ;;  %v105_v5 = vshll.u32 %v89_v51, 13  ;;  %v106_v8 = vshll.u32 %v90_v52, 13 }
  0x39   :  { %v107_v9 = vshll.u32 %v91_v53, 13  ;;  %v108_v10 = vshll.u32 %v92_v54, 13  ;;  %v109_v11 = vshrl.u32 %v85_v47, 19  ;;  %v110_v12 = vshrl.u32 %v86_v48, 19 }
  0x3a   :  { %v111_v13 = vshrl.u32 %v87_v49, 19  ;;  %v112_v6 = vshrl.u32 %v88_v50, 19  ;;  %v113_v14 = vshrl.u32 %v89_v51, 19  ;;  %v114_v15 = vshrl.u32 %v90_v52, 19 }
  0x3b   :  { %v115_v20 = vshrl.u32 %v91_v53, 19  ;;  %v116_v21 = vshrl.u32 %v92_v54, 19  ;;  %v117_v22 = vor.u32 %v109_v11, %v101_v63  ;;  %v118_v23 = vor.u32 %v110_v12, %v102_v0 }
  0x3c   :  { %v119_v24 = vor.u32 %v111_v13, %v103_v1  ;;  %v120_v25 = vor.u32 %v112_v6, %v104_v4  ;;  %v121_v26 = vor.u32 %v113_v14, %v105_v5  ;;  %v122_v27 = vor.u32 %v114_v15, %v106_v8 }
  0x3d   :  { %v123_v29 = vor.u32 %v115_v20, %v107_v9  ;;  %v124_v30 = vor.u32 %v116_v21, %v108_v10  ;;  %v125_v31 = vxor.u32 %v117_v22, %v93_v55  ;;  %v126_v32 = vxor.u32 %v118_v23, %v94_v56 }
  0x3e   :  { %v127_v33 = vxor.u32 %v119_v24, %v95_v57  ;;  %v128_v34 = vxor.u32 %v120_v25, %v96_v58  ;;  %v129_v35 = vxor.u32 %v121_v26, %v97_v59  ;;  %v130_v36 = vxor.u32 %v122_v27, %v98_v60 }
  0x3f   :  { %v131_v37 = vxor.u32 %v123_v29, %v99_v61  ;;  %v132_v38 = vxor.u32 %v124_v30, %v100_v62  ;;  %v133_v39 = vadd.s32 %v125_v31, %v93_v55  ;;  %v134_v41 = vadd.s32 %v126_v32, %v94_v56 }
  0x40   :  { %v135_v42 = vadd.s32 %v127_v33, %v95_v57  ;;  %v136_v43 = vadd.s32 %v128_v34, %v96_v58  ;;  %v137_v45 = vadd.s32 %v129_v35, %v97_v59  ;;  %v138_v46 = vadd.s32 %v130_v36, %v98_v60 }
  0x41   :  { %v139_v47 = vadd.s32 %v131_v37, %v99_v61  ;;  %v140_v48 = vadd.s32 %v132_v38, %v100_v62  ;;  %v141_v49 = vshll.u32 %v125_v31, 15  ;;  %v142_v50 = vshll.u32 %v126_v32, 15 }
  0x42   :  { %v143_v51 = vshll.u32 %v127_v33, 15  ;;  %v144_v52 = vshll.u32 %v128_v34, 15  ;;  %v145_v53 = vshll.u32 %v129_v35, 15  ;;  %v146_v54 = vshll.u32 %v130_v36, 15 }
  0x43   :  { %v147_v63 = vshll.u32 %v131_v37, 15  ;;  %v148_v0 = vshll.u32 %v132_v38, 15  ;;  %v149_v1 = vshrl.u32 %v125_v31, 17  ;;  %v150_v4 = vshrl.u32 %v126_v32, 17 }
  0x44   :  { %v151_v5 = vshrl.u32 %v127_v33, 17  ;;  %v152_v8 = vshrl.u32 %v128_v34, 17  ;;  %v153_v55 = vshrl.u32 %v129_v35, 17  ;;  %v154_v56 = vshrl.u32 %v130_v36, 17 }
  0x45   :  { %v155_v57 = vshrl.u32 %v131_v37, 17  ;;  %v156_v58 = vshrl.u32 %v132_v38, 17  ;;  %v157_v59 = vor.u32 %v149_v1, %v141_v49  ;;  %v158_v60 = vor.u32 %v150_v4, %v142_v50 }
  0x46   :  { %v159_v61 = vor.u32 %v151_v5, %v143_v51  ;;  %v160_v62 = vor.u32 %v152_v8, %v144_v52  ;;  %v161_v9 = vor.u32 %v153_v55, %v145_v53  ;;  %v162_v10 = vor.u32 %v154_v56, %v146_v54 }
  0x47   :  { %v163_v11 = vor.u32 %v155_v57, %v147_v63  ;;  %v164_v12 = vor.u32 %v156_v58, %v148_v0  ;;  %v165_v13 = vxor.u32 %v157_v59, %v133_v39  ;;  %v166_v6 = vxor.u32 %v158_v60, %v134_v41 }
  0x48   :  { %v167_v14 = vxor.u32 %v159_v61, %v135_v42  ;;  %v168_v15 = vxor.u32 %v160_v62, %v136_v43  ;;  %v169_v20 = vxor.u32 %v161_v9, %v137_v45  ;;  %v170_v21 = vxor.u32 %v162_v10, %v138_v46 }
  0x49   :  { %v171_v22 = vxor.u32 %v163_v11, %v139_v47  ;;  %v172_v23 = vxor.u32 %v164_v12, %v140_v48  ;;  %v173_v24 = vadd.s32 %v165_v13, %v133_v39  ;;  %v174_v25 = vadd.s32 %v166_v6, %v134_v41 }
  0x4a   :  { %v175_v26 = vadd.s32 %v167_v14, %v135_v42  ;;  %v176_v27 = vadd.s32 %v168_v15, %v136_v43  ;;  %v177_v29 = vadd.s32 %v169_v20, %v137_v45  ;;  %v178_v30 = vadd.s32 %v170_v21, %v138_v46 }
  0x4b   :  { %v179_v31 = vadd.s32 %v171_v22, %v139_v47  ;;  %v180_v32 = vadd.s32 %v172_v23, %v140_v48  ;;  %v181_v33 = vshll.u32 %v165_v13, 26  ;;  %v182_v34 = vshll.u32 %v166_v6, 26 }
  0x4c   :  { %v183_v35 = vshll.u32 %v167_v14, 26  ;;  %v184_v36 = vshll.u32 %v168_v15, 26  ;;  %v185_v37 = vshll.u32 %v169_v20, 26  ;;  %v186_v38 = vshll.u32 %v170_v21, 26 }
  0x4d   :  { %v187_v49 = vshll.u32 %v171_v22, 26  ;;  %v188_v50 = vshll.u32 %v172_v23, 26  ;;  %v189_v51 = vshrl.u32 %v165_v13, 6  ;;  %v190_v52 = vshrl.u32 %v166_v6, 6 }
  0x4e   :  { %v191_v53 = vshrl.u32 %v167_v14, 6  ;;  %v192_v54 = vshrl.u32 %v168_v15, 6  ;;  %v193_v39 = vshrl.u32 %v169_v20, 6  ;;  %v194_v41 = vshrl.u32 %v170_v21, 6 }
  0x4f   :  { %v195_v42 = vshrl.u32 %v171_v22, 6  ;;  %v196_v43 = vshrl.u32 %v172_v23, 6  ;;  %v197_v45 = vor.u32 %v189_v51, %v181_v33  ;;  %v198_v46 = vor.u32 %v190_v52, %v182_v34 }
  0x50   :  { %v199_v47 = vor.u32 %v191_v53, %v183_v35  ;;  %v200_v48 = vor.u32 %v192_v54, %v184_v36  ;;  %v201_v63 = vor.u32 %v193_v39, %v185_v37  ;;  %v202_v0 = vor.u32 %v194_v41, %v186_v38 }
  0x51   :  { %v203_v1 = vor.u32 %v195_v42, %v187_v49  ;;  %v204_v4 = vor.u32 %v196_v43, %v188_v50  ;;  %v205_v5 = vxor.u32 %v197_v45, %v173_v24  ;;  %v206_v8 = vxor.u32 %v198_v46, %v174_v25 }
  0x52   :  { %v207_v55 = vxor.u32 %v199_v47, %v175_v26  ;;  %v208_v56 = vxor.u32 %v200_v48, %v176_v27  ;;  %v209_v57 = vxor.u32 %v201_v63, %v177_v29  ;;  %v210_v58 = vxor.u32 %v202_v0, %v178_v30 }
  0x53   :  { %v211_v59 = vxor.u32 %v203_v1, %v179_v31  ;;  %v212_v60 = vxor.u32 %v204_v4, %v180_v32  ;;  %v213_v61 = vadd.s32 %v205_v5, %v173_v24  ;;  %v214_v62 = vadd.s32 %v206_v8, %v174_v25 }
  0x54   :  { %v215_v9 = vadd.s32 %v207_v55, %v175_v26  ;;  %v216_v10 = vadd.s32 %v208_v56, %v176_v27  ;;  %v217_v11 = vadd.s32 %v209_v57, %v177_v29  ;;  %v218_v12 = vadd.s32 %v210_v58, %v178_v30 }
  0x55   :  { %v219_v13 = vadd.s32 %v211_v59, %v179_v31  ;;  %v220_v6 = vadd.s32 %v212_v60, %v180_v32  ;;  %v221_v14 = vshll.u32 %v205_v5, 6  ;;  %v222_v15 = vshll.u32 %v206_v8, 6 }
  0x56   :  { %v223_v20 = vshll.u32 %v207_v55, 6  ;;  %v224_v21 = vshll.u32 %v208_v56, 6  ;;  %v225_v22 = vshll.u32 %v209_v57, 6  ;;  %v226_v23 = vshll.u32 %v210_v58, 6 }
  0x57   :  { %v227_v33 = vshll.u32 %v211_v59, 6  ;;  %v228_v34 = vshll.u32 %v212_v60, 6  ;;  %v229_v35 = vshrl.u32 %v205_v5, 26  ;;  %v230_v36 = vshrl.u32 %v206_v8, 26 }
  0x58   :  { %v231_v37 = vshrl.u32 %v207_v55, 26  ;;  %v232_v38 = vshrl.u32 %v208_v56, 26  ;;  %v233_v24 = vshrl.u32 %v209_v57, 26  ;;  %v234_v25 = vshrl.u32 %v210_v58, 26 }
  0x59   :  { %v235_v26 = vshrl.u32 %v211_v59, 26  ;;  %v236_v27 = vshrl.u32 %v212_v60, 26  ;;  %v237_v29 = vor.u32 %v229_v35, %v221_v14  ;;  %v238_v30 = vor.u32 %v230_v36, %v222_v15 }
  0x5a   :  { %v239_v31 = vor.u32 %v231_v37, %v223_v20  ;;  %v240_v32 = vor.u32 %v232_v38, %v224_v21  ;;  %v241_v49 = vor.u32 %v233_v24, %v225_v22  ;;  %v242_v50 = vor.u32 %v234_v25, %v226_v23 }
  0x5b   :  { %v243_v51 = vor.u32 %v235_v26, %v227_v33  ;;  %v244_v52 = vor.u32 %v236_v27, %v228_v34  ;;  %v245_v53 = vxor.u32 %v237_v29, %v213_v61  ;;  %v246_v54 = vxor.u32 %v238_v30, %v214_v62 }
  0x5c   :  { %v247_v39 = vxor.u32 %v239_v31, %v215_v9  ;;  %v248_v41 = vxor.u32 %v240_v32, %v216_v10  ;;  %v249_v42 = vxor.u32 %v241_v49, %v217_v11  ;;  %v250_v43 = vxor.u32 %v242_v50, %v218_v12 }
  0x5d   :  { %v251_v45 = vxor.u32 %v243_v51, %v219_v13  ;;  %v252_v46 = vxor.u32 %v244_v52, %v220_v6  ;;  %v253_v47 = vadd.s32 %v245_v53, %v213_v61  ;;  %v254_v48 = vadd.s32 %v246_v54, %v214_v62 }
  0x5e   :  { %v255_v63 = vadd.s32 %v247_v39, %v215_v9  ;;  %v256_v0 = vadd.s32 %v248_v41, %v216_v10  ;;  %v257_v1 = vadd.s32 %v249_v42, %v217_v11  ;;  %v258_v4 = vadd.s32 %v250_v43, %v218_v12 }
  0x5f   :  { %v259_v5 = vadd.s32 %v251_v45, %v219_v13  ;;  %v260_v8 = vadd.s32 %v252_v46, %v220_v6  ;;  %v261_v55 = vshll.u32 %v245_v53, 17  ;;  %v262_v56 = vshll.u32 %v246_v54, 17 }
  0x60   :  { %v263_v57 = vshll.u32 %v247_v39, 17  ;;  %v264_v58 = vshll.u32 %v248_v41, 17  ;;  %v265_v59 = vshll.u32 %v249_v42, 17  ;;  %v266_v60 = vshll.u32 %v250_v43, 17 }
  0x61   :  { %v267_v14 = vshll.u32 %v251_v45, 17  ;;  %v268_v15 = vshll.u32 %v252_v46, 17  ;;  %v269_v20 = vshrl.u32 %v245_v53, 15  ;;  %v270_v21 = vshrl.u32 %v246_v54, 15 }
  0x62   :  { %v271_v22 = vshrl.u32 %v247_v39, 15  ;;  %v272_v23 = vshrl.u32 %v248_v41, 15  ;;  %v273_v61 = vshrl.u32 %v249_v42, 15  ;;  %v274_v62 = vshrl.u32 %v250_v43, 15 }
  0x63   :  { %v275_v9 = vshrl.u32 %v251_v45, 15  ;;  %v276_v10 = vshrl.u32 %v252_v46, 15  ;;  %v277_v11 = vor.u32 %v269_v20, %v261_v55  ;;  %v278_v12 = vor.u32 %v270_v21, %v262_v56 }
  0x64   :  { %v279_v13 = vor.u32 %v271_v22, %v263_v57  ;;  %v280_v6 = vor.u32 %v272_v23, %v264_v58  ;;  %v281_v33 = vor.u32 %v273_v61, %v265_v59  ;;  %v282_v34 = vor.u32 %v274_v62, %v266_v60  ;;  %v318_v59 = vld [vmem:[#allocation6] sm:$0xff] }
  0x65   :  { %v283_v35 = vor.u32 %v275_v9, %v267_v14  ;;  %v284_v36 = vor.u32 %v276_v10, %v268_v15  ;;  %v285_v37 = vxor.u32 %v277_v11, %v253_v47  ;;  %v286_v38 = vxor.u32 %v278_v12, %v254_v48 }
  0x66   :  { %v287_v24 = vxor.u32 %v279_v13, %v255_v63  ;;  %v288_v25 = vxor.u32 %v280_v6, %v256_v0  ;;  %v289_v26 = vxor.u32 %v281_v33, %v257_v1  ;;  %v290_v27 = vxor.u32 %v282_v34, %v258_v4 }
  0x67   :  { %v291_v29 = vxor.u32 %v283_v35, %v259_v5  ;;  %v292_v30 = vxor.u32 %v284_v36, %v260_v8  ;;  %v293_v31 = vadd.s32 %v285_v37, %v253_v47  ;;  %v294_v32 = vadd.s32 %v286_v38, %v254_v48 }
  0x68   :  { %v295_v49 = vadd.s32 %v287_v24, %v255_v63  ;;  %v296_v50 = vadd.s32 %v288_v25, %v256_v0  ;;  %v297_v51 = vadd.s32 %v289_v26, %v257_v1  ;;  %v298_v52 = vadd.s32 %v290_v27, %v258_v4 }
  0x69   :  { %v299_v53 = vadd.s32 %v291_v29, %v259_v5  ;;  %v300_v54 = vadd.s32 %v292_v30, %v260_v8  ;;  %v301_v39 = vshrl.u32 %v293_v31, 1  ;;  %v302_v41 = vshrl.u32 %v294_v32, 1 }
  0x6a   :  { %v303_v42 = vshrl.u32 %v295_v49, 1  ;;  %v304_v43 = vshrl.u32 %v296_v50, 1  ;;  %v305_v45 = vshrl.u32 %v297_v51, 1  ;;  %v306_v46 = vshrl.u32 %v298_v52, 1 }
  0x6b   :  { %v307_v55 = vshrl.u32 %v299_v53, 1  ;;  %v308_v56 = vshrl.u32 %v300_v54, 1  ;;  %vm748_vm0 = vcmp.gt.s32.totalorder %v301_v39, 429496729  ;;  %vm752_vm1 = vcmp.gt.s32.totalorder %v302_v41, 429496729 }
  0x6c   :  { %vm756_vm2 = vcmp.gt.s32.totalorder %v303_v42, 429496729  ;;  %vm760_vm3 = vcmp.gt.s32.totalorder %v304_v43, 429496729  ;;  %vm764_vm4 = vcmp.gt.s32.totalorder %v305_v45, 429496729  ;;  %v331_v1 = vrot.slane %v736_v28, %v330_v18 }
  0x6d   :  { %vm771_vm5 = vcmp.gt.s32.totalorder %v306_v46, 429496729  ;;  %vm775_vm6 = vcmp.gt.s32.totalorder %v307_v55, 429496729  ;;  %vm779_vm7 = vcmp.gt.s32.totalorder %v308_v56, 429496729  ;;  %v335_v58 = vrot.slane %v736_v28, %v334_v19 }
  0x6e   :  { %v338_v60 = vsub.s32 4, %v725_v3  ;;  %v342_v14 = vsub.s32 5, %v725_v3  ;;  %v346_v15 = vsub.s32 6, %v725_v3  ;;  %v350_v20 = vsub.s32 7, %v725_v3 }
  0x6f   :  { %v360_v21 = vsel %vm748_vm0, %v741_v40, 0.0  ;;  %v361_v22 = vsel %vm752_vm1, %v746_v44, 0.0  ;;  %v362_v23 = vsel %vm756_vm2, %v331_v1, 0.0  ;;  %v363_v61 = vsel %vm760_vm3, %v335_v58, 0.0 }
  0x70   :  { %v339_v62 = vrot.slane %v736_v28, %v338_v60  ;;  %v343_v9 = vrot.slane %v736_v28, %v342_v14  ;;  %v347_v10 = vrot.slane %v736_v28, %v346_v15  ;;  %v351_v11 = vrot.slane %v736_v28, %v350_v20 }
  0x71   :  { %v376_v12 = vcombine.low %v360_v21, %v361_v22  ;;  %v377_v40 = vcombine.low %v362_v23, %v363_v61  ;;  %v807_v44 = vsub.s32 %v382_v7, %v725_v3  ;;  %v431_v13 = vrot.slane %v318_v59, %v322_v16 }
  0x72   :  { %v364_v6 = vsel %vm764_vm4, %v339_v62, 0.0  ;;  %v365_v33 = vsel %vm771_vm5, %v343_v9, 0.0  ;;  %v366_v34 = vsel %vm775_vm6, %v347_v10, 0.0  ;;  %v367_v28 = vsel %vm779_vm7, %v351_v11, 0.0 }
  0x73   :  { %v378_v35 = vcombine.low %v364_v6, %v365_v33  ;;  %v379_v36 = vcombine.low %v366_v34, %v367_v28  ;;  %v386_v2 = vrot.slane %v376_v12, %v807_v44  ;;  %v393_v7 = vrot.slane %v377_v40, %v807_v44 }
  0x74   :  { %v435_v16 = vrot.slane %v318_v59, %v326_v17  ;;  %v439_v37 = vrot.slane %v318_v59, %v330_v18  ;;  %v443_v38 = vrot.slane %v318_v59, %v334_v19  ;;  %v447_v24 = vrot.slane %v318_v59, %v338_v60 }
  0x75   :  { %v400_v25 = vrot.slane %v378_v35, %v807_v44  ;;  %v407_v26 = vrot.slane %v379_v36, %v807_v44  ;;  %v408_v27 = vcombine.low %v386_v2, %v393_v7  ;;  %v451_v29 = vrot.slane %v318_v59, %v342_v14 }
  0x76   :  { %v455_v30 = vrot.slane %v318_v59, %v346_v15  ;;  %v459_v31 = vrot.slane %v318_v59, %v350_v20  ;;  %v468_v32 = vsel %vm748_vm0, %v431_v13, 0.0  ;;  %v469_v17 = vsel %vm752_vm1, %v435_v16, 0.0 }
  0x77   :  { %v409_v49 = vcombine.low %v400_v25, %v407_v26  ;;  %v416_v18 = vrot.slane %v408_v27, %v807_v44  ;;  %v470_v3 = vsel %vm756_vm2, %v439_v37, 0.0  ;;  %v471_v19 = vsel %vm760_vm3, %v443_v38, 0.0 }
  0x78   :  { %v472_v50 = vsel %vm764_vm4, %v447_v24, 0.0  ;;  %v473_v51 = vsel %vm771_vm5, %v451_v29, 0.0  ;;  %v474_v52 = vsel %vm775_vm6, %v455_v30, 0.0  ;;  %v475_v53 = vsel %vm779_vm7, %v459_v31, 0.0 }
  0x79   :  { %v423_v54 = vrot.slane %v409_v49, %v807_v44  ;;  %v484_v39 = vcombine.low %v468_v32, %v469_v17  ;;  %v485_v41 = vcombine.low %v470_v3, %v471_v19  ;;  %v486_v42 = vcombine.low %v472_v50, %v473_v51 }
  0x7a   :  { %v487_v43 = vcombine.low %v474_v52, %v475_v53 }
  0x7b   :  { %v424_v45 = vcombine.low %v416_v18, %v423_v54  ;;  %v494_v46 = vrot.slane %v484_v39, %v807_v44  ;;  %v501_v55 = vrot.slane %v485_v41, %v807_v44  ;;  %v508_v56 = vrot.slane %v486_v42, %v807_v44 }
  0x7c   :  { %v515_v57 = vrot.slane %v487_v43, %v807_v44 }
  0x7d   :  { %426 = vst [vmem:[#allocation8] sm:$0xff] %v424_v45  ;;  %v516_v47 = vcombine.low %v494_v46, %v501_v55 }
  0x7e   :  { %v517_v48 = vcombine.low %v508_v56, %v515_v57 }
  0x7f   :  { %625 = shalt.err (!%p622_p6)
}
  0x80   :  { %s626_s20 = scalar_lea.hbm %s880_s3, 128 }
  0x81   :  { %p627_p7 = scmp.ne.s32.totalorder %s880_s3, %s626_s20  ;;  %p630_p8 = scmp.lt.u32.totalorder %s626_s20, %s880_s3 }
  0x83   :  { %p632_p9 = pnand %p630_p8, %p627_p7 }
  0x85   :  { %635 = shalt.err (!%p632_p9)
}
  0x86   :  { %544 = dma.vmem_to_hbm [thread:$0]  %s542_s2, 128, %s880_s3, [#allocation5]   ;;  %v524_v63 = vrot.slane %v516_v47, %v807_v44  ;;  %v531_v0 = vrot.slane %v517_v48, %v807_v44 }
  0x87   :  { %s670_s27 = smov [#allocation9]  }
  0x88   :  { %s551_s28 = sshll.u32 %s670_s27, 4  ;;  %v532_v1 = vcombine.low %v524_v63, %v531_v0  ;;  %s552_s28 = int_to_ptr.vmem [resolvable:$true] %s551_s28 }
  0x89   :  { %s636_s29 = scalar_lea.vmem %s552_s28, 128  ;;  %p641_p11 = scmp.lt.s32.totalorder %s552_s28, %s552_s28 }
  0x8a   :  { %534 = vst [vmem:[#allocation9] sm:$0xff] %v532_v1  ;;  %p637_p10 = scmp.ne.s32.totalorder %s552_s28, %s636_s29  ;;  %p642_p12 = scmp.lt.s32.totalorder %s636_s29, %s636_s29 }
  0x8c   :  { %p643_p13 = por %p642_p12, %p641_p11 }
  0x8e   :  { %p644_p0 = pnand %p643_p13, %p637_p10 }
  0x90   :  { %647 = shalt.err (!%p644_p0)
}
  0x91   :  { %s648_s3 = scalar_lea.hbm %s881_s4, 128 }
  0x92   :  { %p649_p1 = scmp.ne.s32.totalorder %s881_s4, %s648_s3  ;;  %p652_p2 = scmp.lt.u32.totalorder %s648_s3, %s881_s4 }
  0x94   :  { %p654_p3 = pnand %p652_p2, %p649_p1 }
  0x96   :  { %657 = shalt.err (!%p654_p3)
}
  0x97   :  { %554 = dma.vmem_to_hbm [thread:$0]  %s552_s28, 128, %s881_s4, [#allocation10]  }
  0x98   :  { %662 = dma.done.wait [#allocation5], 128  }
  0x99   :  { %663 = vsyncadd [#allocation5], 4294967168 }
  0x9a   :  { %664 = dma.done.wait [#allocation10], 128  }
  0x9b   :  { %665 = vsyncadd [#allocation10], 4294967168 }
  0x9c   :  { %561 = vsyncpa [#allocation4], 1 }
  0x9d   :  { %562 = vsyncpa [#allocation7], 1 }
  0x9e   :  { %563 = vsyncpa [#allocation5], 1 }
  0x9f   :  { %564 = vsyncpa [#allocation10], 1 }

</bundles_post_ra>
